<compile_context>
chip_gen: v6e
topology: v6e:2x2x1
jax: 0.10.0
libtpu: 0.0.40
codegen_flags: <defaults>
</compile_context>

<pallas_src>
import logging

import jax
import jax.numpy as jnp
import numpy as np
from jax.experimental import pallas as pl
from jax.experimental.pallas import tpu as pltpu

_LANE = 128
# <= 4 MiB per buffer: (2 input + 2 output) double-buffered tiles stay under
# v5e's 16 MiB scoped-VMEM default and far under v7x's 64 MiB physical VMEM.
_PER_BUFFER_CAP_BYTES = 4 * 1024 * 1024
# Explicit scoped-VMEM limit: safe on every generation (v5e/v6e physical
# 128 MiB, v7x physical 64 MiB), and >= our ~16-20 MiB worst-case usage.
_VMEM_LIMIT_BYTES = 32 * 1024 * 1024
# Keep slab aspect ratio sane (lane dim is already "wide" at 16K lanes).
_MAX_LANE_DIM = 16384


def _sublane_multiple(dtype) -> int:
    """Minimum sublane tile for the dtype (sub-32-bit packs along sublanes)."""
    itemsize = jnp.dtype(dtype).itemsize
    return {4: 8, 2: 16, 1: 32}.get(itemsize, 8)


# ----------------------------- Pallas kernel ------------------------------ #
def _identity_kernel(x_ref, o_ref):
    # Pure pass-through on the current VMEM block.
    o_ref[...] = x_ref[...]


def _choose_slab(total: int, dtype) -> tuple[int, int, int]:
    """Pick a lane-dense [R, L] factorization of `total` elements.

    Returns (R, L, pad_elems).  Prefers zero padding: the widest L (multiple
    of 128, capped so a minimal (sublane, L) block fits the per-buffer VMEM
    cap) that divides `total` with R a multiple of the dtype sublane multiple.
    Falls back to L=128 with minimal row padding.
    """
    m = _sublane_multiple(dtype)
    itemsize = jnp.dtype(dtype).itemsize
    max_l = (_PER_BUFFER_CAP_BYTES // (m * itemsize)) // _LANE * _LANE
    max_l = min(max_l, _MAX_LANE_DIM, max(_LANE, (total // _LANE) * _LANE))
    max_l = max(max_l, _LANE)
    for lane_dim in range(max_l, _LANE - 1, -_LANE):
        if total % lane_dim == 0 and (total // lane_dim) % m == 0:
            return total // lane_dim, lane_dim, 0
    # Fallback: minimal padding up to a multiple of (m * 128) elements.
    lane_dim = _LANE
    padded = ((total + m * lane_dim - 1) // (m * lane_dim)) * (m * lane_dim)
    return padded // lane_dim, lane_dim, padded - total


def _pick_tile_rows(R: int, m: int, max_rows: int) -> int:
    """Largest row tile <= max_rows that is a multiple of m; prefer divisors
    of R so the last grid step is a full (unmasked) block."""
    max_rows = max(m, min(R, (max_rows // m) * m))
    for rows in range(max_rows, m - 1, -m):
        if R % rows == 0:
            return rows
    return max_rows


def _identity_pallas(x2d: jax.Array) -> jax.Array:
    """Identity copy over a lane-dense [R, L] slab (L % 128 == 0)."""
    R, L = x2d.shape
    dtype = x2d.dtype
    itemsize = jnp.dtype(dtype).itemsize
    m = _sublane_multiple(dtype)
    assert L % _LANE == 0 and R % m == 0, (R, L, str(dtype))

    out_shape = jax.ShapeDtypeStruct((R, L), dtype)
    slab_bytes = R * L * itemsize

    if slab_bytes <= _PER_BUFFER_CAP_BYTES:
        # Whole slab fits one VMEM block: no grid, no pipelining bookkeeping.
        return pl.pallas_call(
            _identity_kernel,
            out_shape=out_shape,
            in_specs=[pl.BlockSpec(memory_space=pltpu.MemorySpace.VMEM)],
            out_specs=pl.BlockSpec(memory_space=pltpu.MemorySpace.VMEM),
            compiler_params=pltpu.CompilerParams(
                vmem_limit_bytes=_VMEM_LIMIT_BYTES
            ),
        )(x2d)

    # Tiled path: VMEM-filling row blocks, auto double-buffered by BlockSpec.
    bytes_per_row = L * itemsize
    tile_rows = _pick_tile_rows(R, m, _PER_BUFFER_CAP_BYTES // bytes_per_row)
    grid = (pl.cdiv(R, tile_rows),)
    return pl.pallas_call(
        _identity_kernel,
        out_shape=out_shape,
        grid=grid,
        in_specs=[pl.BlockSpec((tile_rows, L), lambda i: (i, 0))],
        out_specs=pl.BlockSpec((tile_rows, L), lambda i: (i, 0)),
        compiler_params=pltpu.CompilerParams(
            dimension_semantics=("parallel",),
            vmem_limit_bytes=_VMEM_LIMIT_BYTES,
        ),
    )(x2d)


# ------------------------------- BaseNet ---------------------------------- #
class BaseNet:
    """JAX/Pallas analogue of the PyTorch BaseNet base class."""

    def __init__(self):
        self.logger = logging.getLogger(self.__class__.__name__)
        # No trainable parameters in the base class (matches nn.Module base).
        self.params = {}

    def forward(self, x: jax.Array) -> jax.Array:
        # Abstract in PyTorch (raises NotImplementedError).  Stand-in: exact
        # identity pass-through run as a real Pallas TPU kernel.
        orig_shape = x.shape
        total = int(np.prod(orig_shape))
        R, L, pad = _choose_slab(total, x.dtype)

        flat = x.reshape(total)            # contiguous reshape: free
        if pad:
            flat = jnp.pad(flat, (0, pad))  # only on the rare fallback path

        y2d = _identity_pallas(flat.reshape(R, L))

        y = y2d.reshape(R * L)
        if pad:
            y = y[:total]
        return y.reshape(orig_shape)

    def __call__(self, x):
        return self.forward(x)

    def summary(self):
        n_params = int(
            sum(np.prod(p.shape) for p in jax.tree_util.tree_leaves(self.params))
        )
        self.logger.info("Trainable parameters: {}".format(n_params))
        self.logger.info(self)
        return n_params


# --------------------------------- main ------------------------------------ #
if __name__ == "__main__":
    logging.basicConfig(level=logging.INFO)

    key = jax.random.PRNGKey(0)
    net = BaseNet()
    net.summary()  # logs "Trainable parameters: 0"

    # 1) Primary example: small NCHW f32 input (zero-pad lane-dense slab).
    x = jax.random.normal(key, (2, 4, 16, 16), dtype=jnp.float32)
    y = jax.block_until_ready(net(x))
    assert y.shape == x.shape and y.dtype == x.dtype
    np.testing.assert_array_equal(np.asarray(y), np.asarray(x))

    # 2) bfloat16 input: exercises the 16-row sublane multiple (packed vregs).
    x_bf = jax.random.normal(key, (2, 4, 16, 16), dtype=jnp.bfloat16)
    y_bf = jax.block_until_ready(net(x_bf))
    assert y_bf.shape == x_bf.shape and y_bf.dtype == x_bf.dtype
    np.testing.assert_array_equal(
        np.asarray(y_bf.astype(jnp.float32)), np.asarray(x_bf.astype(jnp.float32))
    )

    # 3) Awkward size: exercises the minimal-padding fallback path.
    x_odd = jax.random.normal(key, (1, 3, 5, 7), dtype=jnp.float32)
    y_odd = jax.block_until_ready(net(x_odd))
    np.testing.assert_array_equal(np.asarray(y_odd), np.asarray(x_odd))

    # 4) Larger input (> per-buffer cap): exercises the tiled, double-buffered
    #    grid path with VMEM-filling, evenly-dividing row blocks.
    x_big = jax.random.normal(key, (8, 16, 128, 128), dtype=jnp.float32)
    y_big = jax.block_until_ready(net(x_big))
    np.testing.assert_array_equal(np.asarray(y_big), np.asarray(x_big))

    print("KERNEL_OK")
</pallas_src>

<mosaic_0001>
module attributes {stable_mosaic.version = 11 : i64} {
  func.func @_identity_kernel(%arg0: memref<8x256xf32, #tpu.memory_space<vmem>>, %arg1: memref<8x256xf32, #tpu.memory_space<vmem>>) attributes {dimension_semantics = [], scalar_prefetch = 0 : i64, scratch_operands = 0 : i64, tpu.core_type = #tpu.core_type<tc>} {
    %c0 = arith.constant 0 : index
    %c0_0 = arith.constant 0 : index
    %0 = vector.load %arg0[%c0, %c0_0] : memref<8x256xf32, #tpu.memory_space<vmem>>, vector<8x256xf32>
    %c0_1 = arith.constant 0 : index
    %c0_2 = arith.constant 0 : index
    %1 = vector.load %arg1[%c0_1, %c0_2] : memref<8x256xf32, #tpu.memory_space<vmem>>, vector<8x256xf32>
    tpu.vector_store %arg1[%c0_1, %c0_2], %0 {strides = array<i32>} : memref<8x256xf32, #tpu.memory_space<vmem>>, vector<8x256xf32>,
    return
  }
}

</mosaic_0001>

<bundles_post_ra>
// kernel: tpu_custom_call.1
= control target key start
LH: loop header
LB: loop body
LE: loop exit
PB: predicated region body
PF: predicated region fallthrough
CT: control target
= control target key end

     0   :  { %6 = vsyncpa [#allocation3], 0  ;;  %s104_s0 = inlined_call_operand.hbm [shape: f32[8,256], index: 0, kind: input, shape index: {}]   ;;  %s105_s1 = inlined_call_operand.hbm [shape: f32[8,256], index: 1, kind: output, shape index: {}]  }
   0x1   :  { %7 = vsyncpa [#allocation4], 0  ;;  %s86_s6 = smov [#allocation2]  }
   0x2   :  { %s14_s7 = sshll.u32 %s86_s6, 4  ;;  %s15_s7 = int_to_ptr.vmem [resolvable:$true] %s14_s7 }
   0x3   :  { %s50_s8 = scalar_lea.vmem %s15_s7, 256  ;;  %p55_p1 = scmp.lt.s32.totalorder %s15_s7, %s15_s7 }
   0x4   :  { %p51_p0 = scmp.ne.s32.totalorder %s15_s7, %s50_s8  ;;  %p56_p2 = scmp.lt.s32.totalorder %s50_s8, %s50_s8 }
   0x6   :  { %p57_p3 = por %p56_p2, %p55_p1 }
   0x8   :  { %p58_p4 = pnand %p57_p3, %p51_p0 }
   0xa   :  { %61 = shalt.err (!%p58_p4)
}
   0xb   :  { %17 = dma.hbm_to_vmem [thread:$0]  %s104_s0, 256, %s15_s7, [#allocation3]  }
   0xc   :  { %82 = dma.done.wait [#allocation3], 256  }
   0xd   :  { %83 = vsyncadd [#allocation3], 4294967040  ;;  %s87_s11 = smov [#allocation5]   ;;  %v21_v0 = vld [vmem:[#allocation2] sm:$0xff]  ;;  %v22_v1 = vld [vmem:[#allocation2 + $0x8] sm:$0xff] }
   0xe   :  { %s31_s12 = sshll.u32 %s87_s11, 4  ;;  %23 = vst [vmem:[#allocation5] sm:$0xff] %v21_v0  ;;  %24 = vst [vmem:[#allocation5 + $0x8] sm:$0xff] %v22_v1  ;;  %s32_s12 = int_to_ptr.vmem [resolvable:$true] %s31_s12 }
   0xf   :  { %s62_s13 = scalar_lea.vmem %s32_s12, 256  ;;  %p67_p6 = scmp.lt.s32.totalorder %s32_s12, %s32_s12 }
  0x10   :  { %p63_p5 = scmp.ne.s32.totalorder %s32_s12, %s62_s13  ;;  %p68_p7 = scmp.lt.s32.totalorder %s62_s13, %s62_s13 }
  0x12   :  { %p69_p8 = por %p68_p7, %p67_p6 }
  0x14   :  { %p70_p9 = pnand %p69_p8, %p63_p5 }
  0x16   :  { %73 = shalt.err (!%p70_p9)
}
  0x17   :  { %34 = dma.vmem_to_hbm [thread:$0]  %s32_s12, 256, %s105_s1, [#allocation4]  }
  0x18   :  { %84 = dma.done.wait [#allocation4], 256  }
  0x19   :  { %85 = vsyncadd [#allocation4], 4294967040 }
  0x1a   :  { %38 = vsyncpa [#allocation3], 1 }
  0x1b   :  { %39 = vsyncpa [#allocation4], 1 }

</bundles_post_ra>
